<compile_context>
chip_gen: v5e
topology: v5e:2x2
jax: 0.10.0
libtpu: 0.0.40
codegen_flags: <defaults>
</compile_context>

<pallas_src>
import functools

import jax
import jax.numpy as jnp
from jax.experimental import pallas as pl
from jax.experimental.pallas import tpu as pltpu


def _round_up(n, m):
    return ((n + m - 1) // m) * m


def _eup_supports_bf16():
    """True on TPU generations with a bf16 EUP/VPU (v6e, v7x); False otherwise."""
    try:
        kind = jax.devices()[0].device_kind.lower()
    except Exception:  # pragma: no cover - defensive
        return False
    return any(tag in kind for tag in ("v6", "v7", "7x"))


def _sigmoid(x, *, exp_dtype=jnp.float32):
    # 1 / (1 + exp(-x)). The exp may run in bf16 on v6e/v7x (halves EUP time);
    # the add + approx reciprocal (vrcp, separate EUP slot) stay in f32.
    e = jnp.exp((-x).astype(exp_dtype))
    return pl.reciprocal(1.0 + e.astype(jnp.float32), approx=True)


def generator_kernel(x_ref, w1_ref, b1_ref, w2_ref, b2_ref, o_ref, *, exp_dtype):
    # x_ref : (TB, 1)    f32   latent input tile
    # w1_ref: (1, Hp)    f32   first linear weight (transposed vs. torch), Hp = 256
    # b1_ref: (1, Hp)    f32   (zero-padded 200 -> 256)
    # w2_ref: (Hp, N)    bf16  second linear weight, 56 zero rows appended, N = 784
    # b2_ref: (1, N)     f32
    # o_ref : (TB, N)    bf16  output tile at native 784 width
    x = x_ref[...]                                      # (TB, 1)

    # Layer 1: Linear(1, 256-padded). K=1 matmul degenerates to a broadcasted
    # multiply -> VPU. Padded lanes give sigmoid(0)=0.5, killed by zero rows of w2.
    h = _sigmoid(x * w1_ref[...] + b1_ref[...], exp_dtype=exp_dtype)   # (TB, Hp) f32

    # Layer 2: Linear(256, 784) on the MXU, bf16 operands, f32 accumulation.
    y = jnp.dot(h.astype(jnp.bfloat16), w2_ref[...],
                preferred_element_type=jnp.float32)     # (TB, N) f32
    y = y + b2_ref[...]
    o_ref[...] = _sigmoid(y, exp_dtype=exp_dtype).astype(o_ref.dtype)


def generator_forward(x, w1, b1, w2, b2, *, tb=2048, bf16_exp=None):
    """y = sigmoid(sigmoid(x @ w1 + b1) @ w2 + b2) for x of shape (B, 1).

    Returns bf16 of shape (B, 784).
    """
    B = x.shape[0]
    hidden = w1.shape[1]
    out_dim = w2.shape[1]

    if bf16_exp is None:
        bf16_exp = _eup_supports_bf16()
    exp_dtype = jnp.bfloat16 if bf16_exp else jnp.float32

    # Hidden pad 200 -> 256: two full 128-lane vregs, clean K for the MXU.
    h_pad = _round_up(hidden, 128)
    if h_pad != hidden:
        w1 = jnp.pad(w1, ((0, 0), (0, h_pad - hidden)))
        b1 = jnp.pad(b1, ((0, 0), (0, h_pad - hidden)))
        w2 = jnp.pad(w2, ((0, h_pad - hidden), (0, 0)))  # MUST be zeros (h pad = 0.5)

    # bf16 MXU operand for layer 2 (accumulation stays f32 in the kernel).
    w2 = w2.astype(jnp.bfloat16)

    # Batch tiling: TB rows per grid step (multiple of 8 sublanes); pad the batch
    # up to a multiple of TB so every block is full.
    tb = max(8, min(_round_up(tb, 8), _round_up(B, 8)))
    b_pad = _round_up(B, tb)
    # Give the batch grid >= 2 steps when possible so both v7x TensorCores get
    # work under dimension_semantics=("parallel",) (no effect on 1-TC v5e/v6e).
    if b_pad // tb < 2 and b_pad >= 16:
        tb = _round_up(b_pad // 2, 8)
        b_pad = _round_up(B, tb)
    if b_pad != B:
        x = jnp.pad(x, ((0, b_pad - B), (0, 0)))

    grid = (b_pad // tb,)

    cost = pl.CostEstimate(
        flops=2 * b_pad * h_pad * out_dim + 4 * b_pad * h_pad + 2 * b_pad * out_dim,
        transcendentals=b_pad * (h_pad + out_dim),
        bytes_accessed=(x.size * 4 + w1.size * 4 + b1.size * 4
                        + w2.size * 2 + b2.size * 4 + b_pad * out_dim * 2),
    )

    out = pl.pallas_call(
        functools.partial(generator_kernel, exp_dtype=exp_dtype),
        out_shape=jax.ShapeDtypeStruct((b_pad, out_dim), jnp.bfloat16),
        grid=grid,
        in_specs=[
            pl.BlockSpec((tb, 1), lambda i: (i, 0)),            # x: tiled over batch
            pl.BlockSpec((1, h_pad), lambda i: (0, 0)),         # w1: resident
            pl.BlockSpec((1, h_pad), lambda i: (0, 0)),         # b1: resident
            pl.BlockSpec((h_pad, out_dim), lambda i: (0, 0)),   # w2: resident
            pl.BlockSpec((1, out_dim), lambda i: (0, 0)),       # b2: resident
        ],
        out_specs=pl.BlockSpec((tb, out_dim), lambda i: (i, 0)),
        compiler_params=pltpu.CompilerParams(
            dimension_semantics=("parallel",),    # shard batch across v7x's 2 TCs
            vmem_limit_bytes=32 * 1024 * 1024,
        ),
        cost_estimate=cost,
    )(x, w1, b1, w2, b2)

    # Only slice when batch padding was actually added (avoids an extra XLA copy).
    return out if b_pad == B else out[:B]


def init_params(key):
    """Deterministic init mimicking torch.nn.Linear's U(-1/sqrt(fan_in), 1/sqrt(fan_in))."""
    k1, k2, k3, k4 = jax.random.split(key, 4)
    lim1 = 1.0 / jnp.sqrt(jnp.float32(1))
    lim2 = 1.0 / jnp.sqrt(jnp.float32(200))
    w1 = jax.random.uniform(k1, (1, 200), jnp.float32, -lim1, lim1)    # (in=1, out=200)
    b1 = jax.random.uniform(k2, (1, 200), jnp.float32, -lim1, lim1)
    w2 = jax.random.uniform(k3, (200, 784), jnp.float32, -lim2, lim2)  # (in=200, out=784)
    b2 = jax.random.uniform(k4, (1, 784), jnp.float32, -lim2, lim2)
    return w1, b1, w2, b2


def reference_forward(x, w1, b1, w2, b2):
    h = jax.nn.sigmoid(x @ w1 + b1)
    return jax.nn.sigmoid(h @ w2 + b2)


# TODO(synk): train()/optimiser/plot_progress/pickle from the PyTorch class are
# training/IO utilities, not part of the forward pass; only forward is implemented.

if __name__ == "__main__":
    key = jax.random.PRNGKey(0)
    kx, kp = jax.random.split(key)
    w1, b1, w2, b2 = init_params(kp)

    # Small case consistent with the module: latent input of shape (B, 1).
    B = 2
    x = jax.random.normal(kx, (B, 1), dtype=jnp.float32)
    out = jax.block_until_ready(generator_forward(x, w1, b1, w2, b2))
    ref = reference_forward(x, w1, b1, w2, b2)
    assert out.shape == (B, 784), out.shape
    # bf16 MXU operands + bf16 output + approx-reciprocal (+ bf16 exp on v6e/v7x)
    # -> looser tolerance vs f32 reference.
    err = float(jnp.max(jnp.abs(out.astype(jnp.float32) - ref)))
    assert err < 3e-2, err

    # Exercise the multi-tile batch grid + padding path (grid of 5 steps, TB=8).
    B2 = 37
    x2 = jax.random.normal(jax.random.PRNGKey(1), (B2, 1), dtype=jnp.float32)
    out2 = jax.block_until_ready(generator_forward(x2, w1, b1, w2, b2, tb=8))
    ref2 = reference_forward(x2, w1, b1, w2, b2)
    assert out2.shape == (B2, 784), out2.shape
    err2 = float(jnp.max(jnp.abs(out2.astype(jnp.float32) - ref2)))
    assert err2 < 3e-2, err2

    # Exercise the default-tb path with the 2-step small-batch split (both TCs busy).
    B3 = 20
    x3 = jax.random.normal(jax.random.PRNGKey(2), (B3, 1), dtype=jnp.float32)
    out3 = jax.block_until_ready(generator_forward(x3, w1, b1, w2, b2))
    ref3 = reference_forward(x3, w1, b1, w2, b2)
    assert out3.shape == (B3, 784), out3.shape
    err3 = float(jnp.max(jnp.abs(out3.astype(jnp.float32) - ref3)))
    assert err3 < 3e-2, err3

    print("KERNEL_OK")
</pallas_src>

<mosaic_0001>
module attributes {stable_mosaic.version = 11 : i64} {
  func.func @generator_kernel(%arg0: i32, %arg1: memref<8x1xf32, #tpu.memory_space<vmem>>, %arg2: memref<1x256xf32, #tpu.memory_space<vmem>>, %arg3: memref<1x256xf32, #tpu.memory_space<vmem>>, %arg4: memref<256x784xbf16, #tpu.memory_space<vmem>>, %arg5: memref<1x784xf32, #tpu.memory_space<vmem>>, %arg6: memref<8x784xbf16, #tpu.memory_space<vmem>>) attributes {dimension_semantics = [#tpu.dimension_semantics<parallel>], iteration_bounds = array<i64: 1>, scalar_prefetch = 0 : i64, scratch_operands = 0 : i64, tpu.core_type = #tpu.core_type<tc>, window_params = [{transform_indices = @transform_0, window_bounds = array<i64: 8, 1>}, {pipeline_mode = #tpu.pipeline_mode<synchronous>, transform_indices = @transform_1, window_bounds = array<i64: 1, 256>}, {pipeline_mode = #tpu.pipeline_mode<synchronous>, transform_indices = @transform_2, window_bounds = array<i64: 1, 256>}, {pipeline_mode = #tpu.pipeline_mode<synchronous>, transform_indices = @transform_3, window_bounds = array<i64: 256, 784>}, {pipeline_mode = #tpu.pipeline_mode<synchronous>, transform_indices = @transform_4, window_bounds = array<i64: 1, 784>}, {transform_indices = @transform_5, window_bounds = array<i64: 8, 784>}]} {
    %c0 = arith.constant 0 : index
    %c0_0 = arith.constant 0 : index
    %0 = vector.load %arg1[%c0, %c0_0] : memref<8x1xf32, #tpu.memory_space<vmem>>, vector<8x1xf32>
    %c0_1 = arith.constant 0 : index
    %c0_2 = arith.constant 0 : index
    %1 = vector.load %arg2[%c0_1, %c0_2] : memref<1x256xf32, #tpu.memory_space<vmem>>, vector<1x256xf32>
    %2 = vector.broadcast %0 : vector<8x1xf32> to vector<8x256xf32>
    %3 = vector.broadcast %1 : vector<1x256xf32> to vector<8x256xf32>
    %4 = arith.mulf %2, %3 : vector<8x256xf32>
    %c0_3 = arith.constant 0 : index
    %c0_4 = arith.constant 0 : index
    %5 = vector.load %arg3[%c0_3, %c0_4] : memref<1x256xf32, #tpu.memory_space<vmem>>, vector<1x256xf32>
    %6 = vector.broadcast %5 : vector<1x256xf32> to vector<8x256xf32>
    %7 = arith.addf %4, %6 : vector<8x256xf32>
    %cst = arith.constant 0.000000e+00 : f32
    %8 = vector.broadcast %cst : f32 to vector<8x256xf32>
    %9 = arith.subf %8, %7 : vector<8x256xf32>
    %10 = math.exp %9 : vector<8x256xf32>
    %cst_5 = arith.constant 1.000000e+00 : f32
    %11 = vector.broadcast %cst_5 : f32 to vector<8x256xf32>
    %12 = arith.addf %11, %10 : vector<8x256xf32>
    %13 = tpu.reciprocal %12 {approx = true} : vector<8x256xf32> -> vector<8x256xf32>
    %14 = arith.truncf %13 : vector<8x256xf32> to vector<8x256xbf16>
    %c0_6 = arith.constant 0 : index
    %c0_7 = arith.constant 0 : index
    %15 = vector.load %arg4[%c0_6, %c0_7] : memref<256x784xbf16, #tpu.memory_space<vmem>>, vector<256x784xbf16>
    %cst_8 = arith.constant dense<0.000000e+00> : vector<8x784xf32>
    %16 = tpu.matmul %14, %15, %cst_8 {dimension_numbers = #tpu.dot_dimension_numbers<[1], [0], [0], [1], [0, 0, 1, 1], [], []>} : vector<8x256xbf16>, vector<256x784xbf16>, vector<8x784xf32> -> vector<8x784xf32>
    %c0_9 = arith.constant 0 : index
    %c0_10 = arith.constant 0 : index
    %17 = vector.load %arg5[%c0_9, %c0_10] : memref<1x784xf32, #tpu.memory_space<vmem>>, vector<1x784xf32>
    %18 = vector.broadcast %17 : vector<1x784xf32> to vector<8x784xf32>
    %19 = arith.addf %16, %18 : vector<8x784xf32>
    %cst_11 = arith.constant 0.000000e+00 : f32
    %20 = vector.broadcast %cst_11 : f32 to vector<8x784xf32>
    %21 = arith.subf %20, %19 : vector<8x784xf32>
    %22 = math.exp %21 : vector<8x784xf32>
    %cst_12 = arith.constant 1.000000e+00 : f32
    %23 = vector.broadcast %cst_12 : f32 to vector<8x784xf32>
    %24 = arith.addf %23, %22 : vector<8x784xf32>
    %25 = tpu.reciprocal %24 {approx = true} : vector<8x784xf32> -> vector<8x784xf32>
    %26 = arith.truncf %25 : vector<8x784xf32> to vector<8x784xbf16>
    %c0_13 = arith.constant 0 : index
    %c0_14 = arith.constant 0 : index
    %27 = vector.load %arg6[%c0_13, %c0_14] : memref<8x784xbf16, #tpu.memory_space<vmem>>, vector<8x784xbf16>
    tpu.vector_store %arg6[%c0_13, %c0_14], %26 {strides = array<i32>} : memref<8x784xbf16, #tpu.memory_space<vmem>>, vector<8x784xbf16>,
    return
  }
  func.func @transform_0(%arg0: i32) -> (i32, i32) {
    %c0_i32 = arith.constant 0 : i32
    %c0_i32_0 = arith.constant 0 : i32
    return %arg0, %c0_i32 : i32, i32
  }
  func.func @transform_1(%arg0: i32) -> (i32, i32) {
    %c0_i32 = arith.constant 0 : i32
    %c0_i32_0 = arith.constant 0 : i32
    %c0_i32_1 = arith.constant 0 : i32
    return %c0_i32, %c0_i32_0 : i32, i32
  }
  func.func @transform_2(%arg0: i32) -> (i32, i32) {
    %c0_i32 = arith.constant 0 : i32
    %c0_i32_0 = arith.constant 0 : i32
    %c0_i32_1 = arith.constant 0 : i32
    return %c0_i32, %c0_i32_0 : i32, i32
  }
  func.func @transform_3(%arg0: i32) -> (i32, i32) {
    %c0_i32 = arith.constant 0 : i32
    %c0_i32_0 = arith.constant 0 : i32
    %c0_i32_1 = arith.constant 0 : i32
    return %c0_i32, %c0_i32_0 : i32, i32
  }
  func.func @transform_4(%arg0: i32) -> (i32, i32) {
    %c0_i32 = arith.constant 0 : i32
    %c0_i32_0 = arith.constant 0 : i32
    %c0_i32_1 = arith.constant 0 : i32
    return %c0_i32, %c0_i32_0 : i32, i32
  }
  func.func @transform_5(%arg0: i32) -> (i32, i32) {
    %c0_i32 = arith.constant 0 : i32
    %c0_i32_0 = arith.constant 0 : i32
    return %arg0, %c0_i32 : i32, i32
  }
}

</mosaic_0001>

<bundles_post_ra>
// kernel: tpu_custom_call.1
= control target key start
LH: loop header
LB: loop body
LE: loop exit
PB: predicated region body
PF: predicated region fallthrough
CT: control target
= control target key end

     0   :  { %v1642_v3 = vmov 0   ;;  %s2388_s0 = inlined_call_operand.vmem [shape: f32[8,1], index: 0, kind: input, shape index: {}]   ;;  %s2389_s1 = inlined_call_operand.vmem [shape: f32[1,256], index: 1, kind: input, shape index: {}]   ;;  %s2390_s2 = inlined_call_operand.vmem [shape: f32[1,256], index: 2, kind: input, shape index: {}]   ;;  %s2391_s3 = inlined_call_operand.vmem [shape: bf16[256,784], index: 3, kind: input, shape index: {}]   ;;  %s2392_s4 = inlined_call_operand.vmem [shape: f32[1,784], index: 4, kind: input, shape index: {}]   ;;  %s2393_s5 = inlined_call_operand.hbm [shape: bf16[8,784], index: 5, kind: output, shape index: {}]  }
   0x1   :  { %v21_v0 = vld [vmem:[%s2388_s0] sm:$0xff]  ;;  %v1215_v1 = vld [vmem:[%s2391_s3 + $0x188] sm:$0xf]  ;;  %1579 = vset.pattern.permute.xlu0 %v1642_v3  ;;  %v1514_v7 = vld [vmem:[%s2391_s3 + $0x18c] sm:$0xf] }
   0x2   :  { %v1517_v2 = vld [vmem:[%s2391_s3 + $0x1a0] sm:$0xf0]  ;;  %v1439_v5 = vld [vmem:[%s2391_s3 + $0x348] sm:$0xf]  ;;  %25 = vperm.xlu0 %1579, %v21_v0   ;;  %v1570_v10 = vld [vmem:[%s2391_s3 + $0x34c] sm:$0xf] }
   0x3   :  { %v1216_v4 = vor.u32 %v1517_v2, %v1215_v1  ;;  %v1573_v6 = vld [vmem:[%s2391_s3 + $0x360] sm:$0xf0]  ;;  %v1217_v9 = vld [vmem:[%s2391_s3 + $0x1a4] sm:$0xf0]  ;;  %v1187_v14 = vld [vmem:[%s2391_s3 + $0x150] sm:$0xf] }
   0x4   :  { %v1440_v8 = vor.u32 %v1573_v6, %v1439_v5  ;;  %v1441_v11 = vld [vmem:[%s2391_s3 + $0x364] sm:$0xf0]  ;;  %v1220_v12 = vor.u32 %v1514_v7, %v1217_v9  ;;  %v1510_v15 = vld [vmem:[%s2391_s3 + $0x168] sm:$0xf0]  ;;  %v1411_v16 = vld [vmem:[%s2391_s3 + $0x310] sm:$0xf] }
   0x5   :  { %775 = vmatpush.bf16.msra.mxu0 %v1216_v4  ;;  %v1444_v13 = vor.u32 %v1570_v10, %v1441_v11  ;;  %v1188_v17 = vor.u32 %v1510_v15, %v1187_v14  ;;  %v1566_v18 = vld [vmem:[%s2391_s3 + $0x328] sm:$0xf0]  ;;  %v1507_v19 = vld [vmem:[%s2391_s3 + $0x154] sm:$0xf]  ;;  %v1189_v20 = vld [vmem:[%s2391_s3 + $0x16c] sm:$0xf0] }
   0x6   :  { %788 = vmatpush.bf16.msra.mxu1 %v1440_v8  ;;  %801 = vmatpush.bf16.msra.mxu2 %v1220_v12  ;;  %v1412_v21 = vor.u32 %v1566_v18, %v1411_v16  ;;  %v1192_v22 = vor.u32 %v1507_v19, %v1189_v20  ;;  %v1563_v23 = vld [vmem:[%s2391_s3 + $0x314] sm:$0xf]  ;;  %v1413_v24 = vld [vmem:[%s2391_s3 + $0x32c] sm:$0xf0]  ;;  %v1159_v25 = vld [vmem:[%s2391_s3 + $0x118] sm:$0xf] }
   0x7   :  { %814 = vmatpush.bf16.msra.mxu3 %v1444_v13  ;;  %v1416_v26 = vor.u32 %v1563_v23, %v1413_v24  ;;  %v1503_v27 = vld [vmem:[%s2391_s3 + $0x130] sm:$0xf0]  ;;  %v1383_v28 = vld [vmem:[%s2391_s3 + $0x2d8] sm:$0xf]  ;;  %v1500_v31 = vld [vmem:[%s2391_s3 + $0x11c] sm:$0xf] }
   0x8   :  { %v1559_v29 = vld [vmem:[%s2391_s3 + $0x2f0] sm:$0xf0]  ;;  %v1160_v30 = vor.u32 %v1503_v27, %v1159_v25  ;;  %v1161_v32 = vld [vmem:[%s2391_s3 + $0x134] sm:$0xf0]  ;;  %v1556_v33 = vld [vmem:[%s2391_s3 + $0x2dc] sm:$0xf] }
   0x9   :  { %776 = vmatpush.bf16.msra.mxu0 %v1188_v17  ;;  %v1384_v34 = vor.u32 %v1559_v29, %v1383_v28  ;;  %v1385_v35 = vld [vmem:[%s2391_s3 + $0x2f4] sm:$0xf0]  ;;  %v1131_v36 = vld [vmem:[%s2391_s3 + $0xe0] sm:$0xf]  ;;  %v1496_v37 = vld [vmem:[%s2391_s3 + $0xf8] sm:$0xf0]  ;;  %v1164_v38 = vor.u32 %v1500_v31, %v1161_v32 }
   0xa   :  { %789 = vmatpush.bf16.msra.mxu1 %v1412_v21  ;;  %802 = vmatpush.bf16.msra.mxu2 %v1192_v22  ;;  %v1388_v39 = vor.u32 %v1556_v33, %v1385_v35  ;;  %v1355_v40 = vld [vmem:[%s2391_s3 + $0x2a0] sm:$0xf]  ;;  %v1552_v41 = vld [vmem:[%s2391_s3 + $0x2b8] sm:$0xf0]  ;;  %v1493_v42 = vld [vmem:[%s2391_s3 + $0xe4] sm:$0xf]  ;;  %v1132_v46 = vor.u32 %v1496_v37, %v1131_v36 }
   0xb   :  { %815 = vmatpush.bf16.msra.mxu3 %v1416_v26  ;;  %v1133_v43 = vld [vmem:[%s2391_s3 + $0xfc] sm:$0xf0]  ;;  %v1549_v44 = vld [vmem:[%s2391_s3 + $0x2a4] sm:$0xf]  ;;  %v1356_v47 = vor.u32 %v1552_v41, %v1355_v40  ;;  %v1103_v48 = vld [vmem:[%s2391_s3 + $0xa8] sm:$0xf] }
   0xc   :  { %v1357_v45 = vld [vmem:[%s2391_s3 + $0x2bc] sm:$0xf0]  ;;  %v1489_v49 = vld [vmem:[%s2391_s3 + $0xc0] sm:$0xf0]  ;;  %v1136_v50 = vor.u32 %v1493_v42, %v1133_v43  ;;  %v1327_v52 = vld [vmem:[%s2391_s3 + $0x268] sm:$0xf] }
   0xd   :  { %777 = vmatpush.bf16.msra.mxu0 %v1160_v30  ;;  %v1360_v51 = vor.u32 %v1549_v44, %v1357_v45  ;;  %v1545_v53 = vld [vmem:[%s2391_s3 + $0x280] sm:$0xf0]  ;;  %v1486_v54 = vld [vmem:[%s2391_s3 + $0xac] sm:$0xf]  ;;  %v1105_v55 = vld [vmem:[%s2391_s3 + $0xc4] sm:$0xf0]  ;;  %v1104_v58 = vor.u32 %v1489_v49, %v1103_v48 }
   0xe   :  { %790 = vmatpush.bf16.msra.mxu1 %v1384_v34  ;;  %803 = vmatpush.bf16.msra.mxu2 %v1164_v38  ;;  %v1542_v56 = vld [vmem:[%s2391_s3 + $0x26c] sm:$0xf]  ;;  %v1329_v57 = vld [vmem:[%s2391_s3 + $0x284] sm:$0xf0]  ;;  %v1328_v59 = vor.u32 %v1545_v53, %v1327_v52  ;;  %v1075_v60 = vld [vmem:[%s2391_s3 + $0x70] sm:$0xf]  ;;  %v1108_v62 = vor.u32 %v1486_v54, %v1105_v55 }
   0xf   :  { %816 = vmatpush.bf16.msra.mxu3 %v1388_v39  ;;  %v1482_v61 = vld [vmem:[%s2391_s3 + $0x88] sm:$0xf0]  ;;  %v1332_v63 = vor.u32 %v1542_v56, %v1329_v57  ;;  %v1299_v0 = vld [vmem:[%s2391_s3 + $0x230] sm:$0xf]  ;;  %v1479_v2 = vld [vmem:[%s2391_s3 + $0x74] sm:$0xf] }
  0x10   :  { %v1538_v1 = vld [vmem:[%s2391_s3 + $0x248] sm:$0xf0]  ;;  %v1077_v3 = vld [vmem:[%s2391_s3 + $0x8c] sm:$0xf0]  ;;  %v1535_v4 = vld [vmem:[%s2391_s3 + $0x234] sm:$0xf]  ;;  %v1076_v6 = vor.u32 %v1482_v61, %v1075_v60 }
  0x11   :  { %778 = vmatpush.bf16.msra.mxu0 %v1132_v46  ;;  %v1301_v5 = vld [vmem:[%s2391_s3 + $0x24c] sm:$0xf0]  ;;  %v1300_v7 = vor.u32 %v1538_v1, %v1299_v0  ;;  %v1047_v8 = vld [vmem:[%s2391_s3 + $0x38] sm:$0xf]  ;;  %v1475_v9 = vld [vmem:[%s2391_s3 + $0x50] sm:$0xf0]  ;;  %v1080_v10 = vor.u32 %v1479_v2, %v1077_v3 }
  0x12   :  { %791 = vmatpush.bf16.msra.mxu1 %v1356_v47  ;;  %804 = vmatpush.bf16.msra.mxu2 %v1136_v50  ;;  %v1304_v11 = vor.u32 %v1535_v4, %v1301_v5  ;;  %v1271_v12 = vld [vmem:[%s2391_s3 + $0x1f8] sm:$0xf]  ;;  %v1531_v13 = vld [vmem:[%s2391_s3 + $0x210] sm:$0xf0]  ;;  %v1472_v14 = vld [vmem:[%s2391_s3 + $0x3c] sm:$0xf]  ;;  %v1048_v18 = vor.u32 %v1475_v9, %v1047_v8 }
  0x13   :  { %817 = vmatpush.bf16.msra.mxu3 %v1360_v51  ;;  %v1049_v15 = vld [vmem:[%s2391_s3 + $0x54] sm:$0xf0]  ;;  %v1528_v16 = vld [vmem:[%s2391_s3 + $0x1fc] sm:$0xf]  ;;  %v1019_v19 = vld [vmem:[%s2391_s3] sm:$0xf]  ;;  %v1272_v22 = vor.u32 %v1531_v13, %v1271_v12 }
  0x14   :  { %v1273_v17 = vld [vmem:[%s2391_s3 + $0x214] sm:$0xf0]  ;;  %v1468_v20 = vld [vmem:[%s2391_s3 + $0x18] sm:$0xf0]  ;;  %v1243_v21 = vld [vmem:[%s2391_s3 + $0x1c0] sm:$0xf]  ;;  %v1052_v26 = vor.u32 %v1472_v14, %v1049_v15 }
  0x15   :  { %779 = vmatpush.bf16.msra.mxu0 %v1104_v58  ;;  %v1524_v23 = vld [vmem:[%s2391_s3 + $0x1d8] sm:$0xf0]  ;;  %v1465_v24 = vld [vmem:[%s2391_s3 + $0x4] sm:$0xf]  ;;  %v1021_v25 = vld [vmem:[%s2391_s3 + $0x1c] sm:$0xf0]  ;;  %v1276_v27 = vor.u32 %v1528_v16, %v1273_v17 }
  0x16   :  { %792 = vmatpush.bf16.msra.mxu1 %v1328_v59  ;;  %805 = vmatpush.bf16.msra.mxu2 %v1108_v62  ;;  %v1223_v28 = vld [vmem:[%s2391_s3 + $0x190] sm:$0xf]  ;;  %v1518_v29 = vld [vmem:[%s2391_s3 + $0x1a8] sm:$0xf0] }
  0x17   :  { %818 = vmatpush.bf16.msra.mxu3 %v1332_v63 }
  0x19   :  { %780 = vmatpush.bf16.msra.mxu0 %v1076_v6 }
  0x1a   :  { %793 = vmatpush.bf16.msra.mxu1 %v1300_v7  ;;  %806 = vmatpush.bf16.msra.mxu2 %v1080_v10 }
  0x1b   :  { %819 = vmatpush.bf16.msra.mxu3 %v1304_v11 }
  0x1c   :  { %10 = vsyncpa [#allocation3], 0  ;;  %v1521_v30 = vld [vmem:[%s2391_s3 + $0x1c4] sm:$0xf]  ;;  %v1245_v31 = vld [vmem:[%s2391_s3 + $0x1dc] sm:$0xf0]  ;;  %v1020_v33 = vor.u32 %v1468_v20, %v1019_v19  ;;  %v1244_v37 = vor.u32 %v1524_v23, %v1243_v21  ;;  %v1224_v38 = vor.u32 %v1518_v29, %v1223_v28  ;;  %v1024_v41 = vor.u32 %v1465_v24, %v1021_v25 }
  0x1d   :  { %v1447_v32 = vld [vmem:[%s2391_s3 + $0x350] sm:$0xf]  ;;  %781 = vmatpush.bf16.msra.mxu0 %v1048_v18  ;;  %v1574_v34 = vld [vmem:[%s2391_s3 + $0x368] sm:$0xf0]  ;;  %v1515_v35 = vld [vmem:[%s2391_s3 + $0x194] sm:$0xf]  ;;  %v1248_v42 = vor.u32 %v1521_v30, %v1245_v31 }
  0x1e   :  { %v1225_v36 = vld [vmem:[%s2391_s3 + $0x1ac] sm:$0xf0]  ;;  %794 = vmatpush.bf16.msra.mxu1 %v1272_v22  ;;  %v1571_v39 = vld [vmem:[%s2391_s3 + $0x354] sm:$0xf]  ;;  %807 = vmatpush.bf16.msra.mxu2 %v1052_v26  ;;  %v1448_v43 = vor.u32 %v1574_v34, %v1447_v32  ;;  %v1195_v46 = vld [vmem:[%s2391_s3 + $0x158] sm:$0xf] }
  0x1f   :  { %v1449_v40 = vld [vmem:[%s2391_s3 + $0x36c] sm:$0xf0]  ;;  %820 = vmatpush.bf16.msra.mxu3 %v1276_v27  ;;  %v1228_v44 = vor.u32 %v1515_v35, %v1225_v36  ;;  %v1511_v47 = vld [vmem:[%s2391_s3 + $0x170] sm:$0xf0]  ;;  %v1419_v48 = vld [vmem:[%s2391_s3 + $0x318] sm:$0xf] }
  0x20   :  { %v1452_v45 = vor.u32 %v1571_v39, %v1449_v40  ;;  %v1196_v49 = vor.u32 %v1511_v47, %v1195_v46  ;;  %v1567_v50 = vld [vmem:[%s2391_s3 + $0x330] sm:$0xf0]  ;;  %v1508_v51 = vld [vmem:[%s2391_s3 + $0x15c] sm:$0xf]  ;;  %v1197_v52 = vld [vmem:[%s2391_s3 + $0x174] sm:$0xf0] }
  0x21   :  { %782 = vmatpush.bf16.msra.mxu0 %v1020_v33  ;;  %v1420_v53 = vor.u32 %v1567_v50, %v1419_v48  ;;  %v1200_v54 = vor.u32 %v1508_v51, %v1197_v52  ;;  %v1564_v55 = vld [vmem:[%s2391_s3 + $0x31c] sm:$0xf]  ;;  %v1421_v56 = vld [vmem:[%s2391_s3 + $0x334] sm:$0xf0]  ;;  %v1167_v58 = vld [vmem:[%s2391_s3 + $0x120] sm:$0xf] }
  0x22   :  { %795 = vmatpush.bf16.msra.mxu1 %v1244_v37  ;;  %808 = vmatpush.bf16.msra.mxu2 %v1024_v41  ;;  %v1424_v57 = vor.u32 %v1564_v55, %v1421_v56  ;;  %v1504_v59 = vld [vmem:[%s2391_s3 + $0x138] sm:$0xf0]  ;;  %v1391_v60 = vld [vmem:[%s2391_s3 + $0x2e0] sm:$0xf]  ;;  %v1501_v63 = vld [vmem:[%s2391_s3 + $0x124] sm:$0xf] }
  0x23   :  { %821 = vmatpush.bf16.msra.mxu3 %v1248_v42  ;;  %v1168_v61 = vor.u32 %v1504_v59, %v1167_v58  ;;  %v1560_v62 = vld [vmem:[%s2391_s3 + $0x2f8] sm:$0xf0]  ;;  %v1169_v0 = vld [vmem:[%s2391_s3 + $0x13c] sm:$0xf0]  ;;  %v1557_v3 = vld [vmem:[%s2391_s3 + $0x2e4] sm:$0xf] }
  0x24   :  { %v1392_v1 = vor.u32 %v1560_v62, %v1391_v60  ;;  %v1172_v2 = vor.u32 %v1501_v63, %v1169_v0  ;;  %v1393_v4 = vld [vmem:[%s2391_s3 + $0x2fc] sm:$0xf0]  ;;  %v1139_v6 = vld [vmem:[%s2391_s3 + $0xe8] sm:$0xf]  ;;  %v1497_v7 = vld [vmem:[%s2391_s3 + $0x100] sm:$0xf0] }
  0x25   :  { %827 = vmatpush.bf16.msrb.mxu0 %v1224_v38  ;;  %v1396_v5 = vor.u32 %v1557_v3, %v1393_v4  ;;  %v1363_v8 = vld [vmem:[%s2391_s3 + $0x2a8] sm:$0xf]  ;;  %v1140_v9 = vor.u32 %v1497_v7, %v1139_v6  ;;  %v1553_v10 = vld [vmem:[%s2391_s3 + $0x2c0] sm:$0xf0]  ;;  %v1494_v11 = vld [vmem:[%s2391_s3 + $0xec] sm:$0xf] }
  0x26   :  { %840 = vmatpush.bf16.msrb.mxu1 %v1448_v43  ;;  %853 = vmatpush.bf16.msrb.mxu2 %v1228_v44  ;;  %v1141_v12 = vld [vmem:[%s2391_s3 + $0x104] sm:$0xf0]  ;;  %v1364_v13 = vor.u32 %v1553_v10, %v1363_v8  ;;  %v1550_v15 = vld [vmem:[%s2391_s3 + $0x2ac] sm:$0xf]  ;;  %v1111_v18 = vld [vmem:[%s2391_s3 + $0xb0] sm:$0xf] }
  0x27   :  { %866 = vmatpush.bf16.msrb.mxu3 %v1452_v45  ;;  %v1144_v14 = vor.u32 %v1494_v11, %v1141_v12  ;;  %v1365_v16 = vld [vmem:[%s2391_s3 + $0x2c4] sm:$0xf0]  ;;  %v1490_v19 = vld [vmem:[%s2391_s3 + $0xc8] sm:$0xf0]  ;;  %v1335_v20 = vld [vmem:[%s2391_s3 + $0x270] sm:$0xf] }
  0x28   :  { %v1368_v17 = vor.u32 %v1550_v15, %v1365_v16  ;;  %v1112_v21 = vor.u32 %v1490_v19, %v1111_v18  ;;  %v1546_v22 = vld [vmem:[%s2391_s3 + $0x288] sm:$0xf0]  ;;  %v1487_v23 = vld [vmem:[%s2391_s3 + $0xb4] sm:$0xf]  ;;  %v1113_v24 = vld [vmem:[%s2391_s3 + $0xcc] sm:$0xf0] }
  0x29   :  { %828 = vmatpush.bf16.msrb.mxu0 %v1196_v49  ;;  %v1336_v25 = vor.u32 %v1546_v22, %v1335_v20  ;;  %v1116_v26 = vor.u32 %v1487_v23, %v1113_v24  ;;  %v1543_v27 = vld [vmem:[%s2391_s3 + $0x274] sm:$0xf]  ;;  %v1337_v28 = vld [vmem:[%s2391_s3 + $0x28c] sm:$0xf0]  ;;  %v1083_v30 = vld [vmem:[%s2391_s3 + $0x78] sm:$0xf] }
  0x2a   :  { %841 = vmatpush.bf16.msrb.mxu1 %v1420_v53  ;;  %854 = vmatpush.bf16.msrb.mxu2 %v1200_v54  ;;  %v1340_v29 = vor.u32 %v1543_v27, %v1337_v28  ;;  %v1483_v31 = vld [vmem:[%s2391_s3 + $0x90] sm:$0xf0]  ;;  %v1307_v32 = vld [vmem:[%s2391_s3 + $0x238] sm:$0xf]  ;;  %v1480_v35 = vld [vmem:[%s2391_s3 + $0x7c] sm:$0xf] }
  0x2b   :  { %867 = vmatpush.bf16.msrb.mxu3 %v1424_v57  ;;  %v1084_v33 = vor.u32 %v1483_v31, %v1083_v30  ;;  %v1539_v34 = vld [vmem:[%s2391_s3 + $0x250] sm:$0xf0]  ;;  %v1085_v36 = vld [vmem:[%s2391_s3 + $0x94] sm:$0xf0]  ;;  %v1536_v39 = vld [vmem:[%s2391_s3 + $0x23c] sm:$0xf] }
  0x2c   :  { %v1308_v37 = vor.u32 %v1539_v34, %v1307_v32  ;;  %v1088_v38 = vor.u32 %v1480_v35, %v1085_v36  ;;  %v1309_v40 = vld [vmem:[%s2391_s3 + $0x254] sm:$0xf0]  ;;  %v1055_v42 = vld [vmem:[%s2391_s3 + $0x40] sm:$0xf]  ;;  %v1476_v43 = vld [vmem:[%s2391_s3 + $0x58] sm:$0xf0] }
  0x2d   :  { %829 = vmatpush.bf16.msrb.mxu0 %v1168_v61  ;;  %v1312_v41 = vor.u32 %v1536_v39, %v1309_v40  ;;  %v1279_v44 = vld [vmem:[%s2391_s3 + $0x200] sm:$0xf]  ;;  %v1056_v45 = vor.u32 %v1476_v43, %v1055_v42  ;;  %v1532_v46 = vld [vmem:[%s2391_s3 + $0x218] sm:$0xf0]  ;;  %v1473_v47 = vld [vmem:[%s2391_s3 + $0x44] sm:$0xf] }
  0x2e   :  { %842 = vmatpush.bf16.msrb.mxu1 %v1392_v1  ;;  %855 = vmatpush.bf16.msrb.mxu2 %v1172_v2  ;;  %v1057_v48 = vld [vmem:[%s2391_s3 + $0x5c] sm:$0xf0]  ;;  %v1280_v49 = vor.u32 %v1532_v46, %v1279_v44  ;;  %v1529_v51 = vld [vmem:[%s2391_s3 + $0x204] sm:$0xf]  ;;  %v1027_v54 = vld [vmem:[%s2391_s3 + $0x8] sm:$0xf] }
  0x2f   :  { %868 = vmatpush.bf16.msrb.mxu3 %v1396_v5  ;;  %v1060_v50 = vor.u32 %v1473_v47, %v1057_v48  ;;  %v1281_v52 = vld [vmem:[%s2391_s3 + $0x21c] sm:$0xf0]  ;;  %v1469_v55 = vld [vmem:[%s2391_s3 + $0x20] sm:$0xf0]  ;;  %v1251_v56 = vld [vmem:[%s2391_s3 + $0x1c8] sm:$0xf] }
  0x30   :  { %v1284_v53 = vor.u32 %v1529_v51, %v1281_v52  ;;  %v1028_v57 = vor.u32 %v1469_v55, %v1027_v54  ;;  %v1525_v58 = vld [vmem:[%s2391_s3 + $0x1e0] sm:$0xf0]  ;;  %v1466_v59 = vld [vmem:[%s2391_s3 + $0xc] sm:$0xf]  ;;  %v1029_v60 = vld [vmem:[%s2391_s3 + $0x24] sm:$0xf0] }
  0x31   :  { %830 = vmatpush.bf16.msrb.mxu0 %v1140_v9  ;;  %v22_v61 = vld [vmem:[%s2389_s1] sm:$0x3]  ;;  %v1252_v62 = vor.u32 %v1525_v58, %v1251_v56  ;;  %v1032_v63 = vor.u32 %v1466_v59, %v1029_v60  ;;  %v1522_v0 = vld [vmem:[%s2391_s3 + $0x1cc] sm:$0xf]  ;;  %v1253_v1 = vld [vmem:[%s2391_s3 + $0x1e4] sm:$0xf0] }
  0x32   :  { %843 = vmatpush.bf16.msrb.mxu1 %v1364_v13  ;;  %856 = vmatpush.bf16.msrb.mxu2 %v1144_v14  ;;  %v1256_v2 = vor.u32 %v1522_v0, %v1253_v1  ;;  %v35_v3 = vld [vmem:[%s2390_s2] sm:$0x3]  ;;  %v29_v4 = vperm.slane %v22_v61, 0  ;;  %v30_v5 = vperm.slane %v22_v61, 1  ;;  %v1519_v22 = vld [vmem:[%s2391_s3 + $0x1b0] sm:$0xf0] }
  0x33   :  { %869 = vmatpush.bf16.msrb.mxu3 %v1368_v17  ;;  %v37_v6 = vperm.slane %v35_v3, 0  ;;  %v38_v7 = vperm.slane %v35_v3, 1  ;;  %v1455_v23 = vld [vmem:[%s2391_s3 + $0x358] sm:$0xf]  ;;  %v1575_v24 = vld [vmem:[%s2391_s3 + $0x370] sm:$0xf0] }
  0x34   :  { %v1572_v27 = vld [vmem:[%s2391_s3 + $0x35c] sm:$0xf]  ;;  %v1457_v28 = vld [vmem:[%s2391_s3 + $0x374] sm:$0xf0]  ;;  %v1203_v34 = vld [vmem:[%s2391_s3 + $0x160] sm:$0xf] }
  0x35   :  { %831 = vmatpush.bf16.msrb.mxu0 %v1112_v21  ;;  %v1231_v21 = vld [vmem:[%s2391_s3 + $0x198] sm:$0xf]  ;;  %v1512_v35 = vld [vmem:[%s2391_s3 + $0x178] sm:$0xf0]  ;;  %v1427_v39 = vld [vmem:[%s2391_s3 + $0x320] sm:$0xf] }
  0x36   :  { %844 = vmatpush.bf16.msrb.mxu1 %v1336_v25  ;;  %857 = vmatpush.bf16.msrb.mxu2 %v1116_v26  ;;  %v1516_v25 = vld [vmem:[%s2391_s3 + $0x19c] sm:$0xf]  ;;  %v1233_v26 = vld [vmem:[%s2391_s3 + $0x1b4] sm:$0xf0]  ;;  %v1232_v32 = vor.u32 %v1519_v22, %v1231_v21  ;;  %v1205_v42 = vld [vmem:[%s2391_s3 + $0x17c] sm:$0xf0] }
  0x37   :  { %870 = vmatpush.bf16.msrb.mxu3 %v1340_v29  ;;  %v1568_v40 = vld [vmem:[%s2391_s3 + $0x338] sm:$0xf0]  ;;  %v1565_v43 = vld [vmem:[%s2391_s3 + $0x324] sm:$0xf]  ;;  %v1429_v44 = vld [vmem:[%s2391_s3 + $0x33c] sm:$0xf0] }
  0x38   :  { %v1428_v46 = vor.u32 %v1568_v40, %v1427_v39  ;;  %v1175_v47 = vld [vmem:[%s2391_s3 + $0x128] sm:$0xf]  ;;  %v1505_v48 = vld [vmem:[%s2391_s3 + $0x140] sm:$0xf0]  ;;  %v1558_v55 = vld [vmem:[%s2391_s3 + $0x2ec] sm:$0xf] }
  0x39   :  { %832 = vmatpush.bf16.msrb.mxu0 %v1084_v33  ;;  %v1456_v33 = vor.u32 %v1575_v24, %v1455_v23  ;;  %v1399_v51 = vld [vmem:[%s2391_s3 + $0x2e8] sm:$0xf]  ;;  %v1561_v52 = vld [vmem:[%s2391_s3 + $0x300] sm:$0xf0]  ;;  %v1147_v59 = vld [vmem:[%s2391_s3 + $0xf0] sm:$0xf] }
  0x3a   :  { %845 = vmatpush.bf16.msrb.mxu1 %v1308_v37  ;;  %858 = vmatpush.bf16.msrb.mxu2 %v1088_v38  ;;  %v1236_v37 = vor.u32 %v1516_v25, %v1233_v26  ;;  %v1460_v38 = vor.u32 %v1572_v27, %v1457_v28  ;;  %v1177_v54 = vld [vmem:[%s2391_s3 + $0x144] sm:$0xf0]  ;;  %v1400_v58 = vor.u32 %v1561_v52, %v1399_v51  ;;  %v1498_v60 = vld [vmem:[%s2391_s3 + $0x108] sm:$0xf0]  ;;  %v1495_v1 = vld [vmem:[%s2391_s3 + $0xf4] sm:$0xf] }
  0x3b   :  { %871 = vmatpush.bf16.msrb.mxu3 %v1312_v41  ;;  %v1509_v41 = vld [vmem:[%s2391_s3 + $0x164] sm:$0xf]  ;;  %v1401_v56 = vld [vmem:[%s2391_s3 + $0x304] sm:$0xf0]  ;;  %v1554_v0 = vld [vmem:[%s2391_s3 + $0x2c8] sm:$0xf0] }
  0x3c   :  { %v1551_v3 = vld [vmem:[%s2391_s3 + $0x2b4] sm:$0xf]  ;;  %v1315_v23 = vld [vmem:[%s2391_s3 + $0x240] sm:$0xf]  ;;  %v1540_v24 = vld [vmem:[%s2391_s3 + $0x258] sm:$0xf0] }
  0x3d   :  { %833 = vmatpush.bf16.msrb.mxu0 %v1056_v45  ;;  %v1204_v45 = vor.u32 %v1512_v35, %v1203_v34  ;;  %v1481_v25 = vld [vmem:[%s2391_s3 + $0x84] sm:$0xf]  ;;  %v1093_v26 = vld [vmem:[%s2391_s3 + $0x9c] sm:$0xf0]  ;;  %v1474_v39 = vld [vmem:[%s2391_s3 + $0x4c] sm:$0xf] }
  0x3e   :  { %846 = vmatpush.bf16.msrb.mxu1 %v1280_v49  ;;  %859 = vmatpush.bf16.msrb.mxu2 %v1060_v50  ;;  %v1208_v49 = vor.u32 %v1509_v41, %v1205_v42  ;;  %v1432_v50 = vor.u32 %v1565_v43, %v1429_v44  ;;  %v1537_v27 = vld [vmem:[%s2391_s3 + $0x244] sm:$0xf]  ;;  %v1317_v28 = vld [vmem:[%s2391_s3 + $0x25c] sm:$0xf0]  ;;  %v1096_v34 = vor.u32 %v1481_v25, %v1093_v26  ;;  %v1065_v40 = vld [vmem:[%s2391_s3 + $0x64] sm:$0xf0] }
  0x3f   :  { %872 = vmatpush.bf16.msrb.mxu3 %v1284_v53  ;;  %v1502_v53 = vld [vmem:[%s2391_s3 + $0x12c] sm:$0xf]  ;;  %v1320_v35 = vor.u32 %v1537_v27, %v1317_v28  ;;  %v1289_v42 = vld [vmem:[%s2391_s3 + $0x224] sm:$0xf0]  ;;  %v1467_v51 = vld [vmem:[%s2391_s3 + $0x14] sm:$0xf] }
  0x40   :  { %v1180_v61 = vor.u32 %v1502_v53, %v1177_v54  ;;  %v1530_v41 = vld [vmem:[%s2391_s3 + $0x20c] sm:$0xf]  ;;  %v1037_v52 = vld [vmem:[%s2391_s3 + $0x2c] sm:$0xf0]  ;;  %v1523_v53 = vld [vmem:[%s2391_s3 + $0x1d4] sm:$0xf] }
  0x41   :  { %834 = vmatpush.bf16.msrb.mxu0 %v1028_v57  ;;  %v1176_v57 = vor.u32 %v1505_v48, %v1175_v47  ;;  %v1259_v47 = vld [vmem:[%s2391_s3 + $0x1d0] sm:$0xf]  ;;  %v1068_v48 = vor.u32 %v1474_v39, %v1065_v40  ;;  %v1099_v25 = vld [vmem:[%s2391_s3 + $0x88] sm:$0xf]  ;;  %v1485_v26 = vld [vmem:[%s2391_s3 + $0xa0] sm:$0xf0] }
  0x42   :  { %847 = vmatpush.bf16.msrb.mxu1 %v1252_v62  ;;  %860 = vmatpush.bf16.msrb.mxu2 %v1032_v63  ;;  %v1404_v62 = vor.u32 %v1558_v55, %v1401_v56  ;;  %v1371_v63 = vld [vmem:[%s2391_s3 + $0x2b0] sm:$0xf]  ;;  %v1239_v55 = vld [vmem:[%s2391_s3 + $0x1a0] sm:$0xf]  ;;  %v1520_v56 = vld [vmem:[%s2391_s3 + $0x1b8] sm:$0xf0] }
  0x43   :  { %873 = vmatpush.bf16.msrb.mxu3 %v1256_v2  ;;  %v1149_v2 = vld [vmem:[%s2391_s3 + $0x10c] sm:$0xf0]  ;;  %v1323_v27 = vld [vmem:[%s2391_s3 + $0x248] sm:$0xf]  ;;  %v1541_v28 = vld [vmem:[%s2391_s3 + $0x260] sm:$0xf0] }
  0x44   :  { %v1261_v54 = vld [vmem:[%s2391_s3 + $0x1ec] sm:$0xf0]  ;;  %v1043_v39 = vld [vmem:[%s2391_s3 + $0x18] sm:$0xf]  ;;  %v1471_v40 = vld [vmem:[%s2391_s3 + $0x30] sm:$0xf0] }
  0x45   :  { %s1008_s1 = sshll.u32 %s2393_s5, 4  ;;  %vm999_vm0 = vcmask 125952   ;;  %s1009_s1 = int_to_ptr.hbm [resolvable:$true] %s1008_s1 }
  0x74   :  { %v26_v8 = vpop.permute.xlu0 %25 }
  0x75   :  { %v33_v9 = vmul.f32 %v29_v4, %v26_v8  ;;  %v34_v10 = vmul.f32 %v30_v5, %v26_v8  ;;  %v1373_v4 = vld [vmem:[%s2391_s3 + $0x2cc] sm:$0xf0]  ;;  %v1148_v5 = vor.u32 %v1498_v60, %v1147_v59  ;;  %v1491_v8 = vld [vmem:[%s2391_s3 + $0xd0] sm:$0xf0] }
  0x77   :  { %v41_v11 = vadd.f32 %v37_v6, %v33_v9  ;;  %v42_v12 = vadd.f32 %v38_v7, %v34_v10  ;;  %v1372_v6 = vor.u32 %v1554_v0, %v1371_v63  ;;  %v1119_v7 = vld [vmem:[%s2391_s3 + $0xb8] sm:$0xf]  ;;  %v1152_v9 = vor.u32 %v1495_v1, %v1149_v2  ;;  %v1211_v1 = vld [vmem:[%s2391_s3 + $0x168] sm:$0xf]  ;;  %v1513_v2 = vld [vmem:[%s2391_s3 + $0x180] sm:$0xf0] }
  0x78   :  { %v1376_v10 = vor.u32 %v1551_v3, %v1373_v4  ;;  %v1240_v63 = vor.u32 %v1520_v56, %v1239_v55  ;;  %v1435_v3 = vld [vmem:[%s2391_s3 + $0x328] sm:$0xf]  ;;  %v1569_v4 = vld [vmem:[%s2391_s3 + $0x340] sm:$0xf0] }
  0x79   :  { %v43_v13 = vsub.f32 0.0, %v41_v11  ;;  %v44_v14 = vsub.f32 0.0, %v42_v12  ;;  %v1343_v11 = vld [vmem:[%s2391_s3 + $0x278] sm:$0xf]  ;;  %v1547_v12 = vld [vmem:[%s2391_s3 + $0x290] sm:$0xf0] }
  0x7b   :  { %v45_v15 = vmul.f32 1.442695, %v43_v13  ;;  %v47_v16 = vmul.f32 1.442695, %v44_v14  ;;  %v1488_v13 = vld [vmem:[%s2391_s3 + $0xbc] sm:$0xf] }
  0x7c   :  { %v1121_v14 = vld [vmem:[%s2391_s3 + $0xd4] sm:$0xf0] }
  0x7d   :  { %1580 = vpow2.f32 %v45_v15  ;;  %v1544_v15 = vld [vmem:[%s2391_s3 + $0x27c] sm:$0xf]  ;;  %v1124_v21 = vor.u32 %v1488_v13, %v1121_v14  ;;  %v1155_v13 = vld [vmem:[%s2391_s3 + $0xf8] sm:$0xf]  ;;  %v1499_v14 = vld [vmem:[%s2391_s3 + $0x110] sm:$0xf0] }
  0x7e   :  { %1582 = vpow2.f32 %v47_v16  ;;  %v1345_v16 = vld [vmem:[%s2391_s3 + $0x294] sm:$0xf0] }
  0x7f   :  { %v1348_v22 = vor.u32 %v1544_v15, %v1345_v16  ;;  %v1379_v15 = vld [vmem:[%s2391_s3 + $0x2b8] sm:$0xf]  ;;  %v1555_v16 = vld [vmem:[%s2391_s3 + $0x2d0] sm:$0xf0] }
  0x83   :  { %v1581_v17 = vpop.eup %1580 }
  0x84   :  { %v1583_v18 = vpop.eup %1582  ;;  %v49_v19 = vadd.f32 1.0, %v1581_v17  ;;  %v1120_v17 = vor.u32 %v1491_v8, %v1119_v7  ;;  %v1183_v7 = vld [vmem:[%s2391_s3 + $0x130] sm:$0xf]  ;;  %v1506_v8 = vld [vmem:[%s2391_s3 + $0x148] sm:$0xf0] }
  0x85   :  { %v50_v20 = vadd.f32 1.0, %v1583_v18  ;;  %v1344_v18 = vor.u32 %v1547_v12, %v1343_v11  ;;  %v1184_v11 = vor.u32 %v1506_v8, %v1183_v7 }
  0x86   :  { %1584 = vrcp.f32 %v49_v19  ;;  %v1091_v19 = vld [vmem:[%s2391_s3 + $0x80] sm:$0xf] }
  0x87   :  { %1586 = vrcp.f32 %v50_v20  ;;  %v1484_v20 = vld [vmem:[%s2391_s3 + $0x98] sm:$0xf0] }
  0x8c   :  { %v1585_v29 = vpop.eup %1584 }
  0x8d   :  { %v1587_v30 = vpop.eup %1586  ;;  %v2091_v31 = vpack.c.bf16 %v1585_v29, %v1585_v29  ;;  %v1092_v29 = vor.u32 %v1484_v20, %v1091_v19  ;;  %v1127_v19 = vld [vmem:[%s2391_s3 + $0xc0] sm:$0xf]  ;;  %v1492_v20 = vld [vmem:[%s2391_s3 + $0xd8] sm:$0xf0] }
  0x8e   :  { %v2099_v36 = vpack.c.bf16 %v1587_v30, %v1587_v30  ;;  %v1316_v30 = vor.u32 %v1540_v24, %v1315_v23  ;;  %v1128_v23 = vor.u32 %v1492_v20, %v1127_v19 }
  0x8f   :  { %783 = vmatmul.bf16.vlgmr.msra.gmra.mxu0 %v2091_v31  ;;  %809 = vmatmul.bf16.vlgmr.msra.gmra.mxu2 %v2091_v31 }
  0x90   :  { %796 = vmatmul.bf16.vlgmr.msra.gmra.mxu1 %v2099_v36  ;;  %822 = vmatmul.bf16.vlgmr.msra.gmra.mxu3 %v2099_v36 }
  0x91   :  { %879 = vmatpush.bf16.msra.mxu0 %v1232_v32  ;;  %892 = vmatpush.bf16.msra.mxu1 %v1456_v33  ;;  %v1063_v32 = vld [vmem:[%s2391_s3 + $0x48] sm:$0xf]  ;;  %v1477_v33 = vld [vmem:[%s2391_s3 + $0x60] sm:$0xf0] }
  0x92   :  { %905 = vmatpush.bf16.msra.mxu2 %v1236_v37  ;;  %918 = vmatpush.bf16.msra.mxu3 %v1460_v38  ;;  %v1287_v37 = vld [vmem:[%s2391_s3 + $0x208] sm:$0xf]  ;;  %v1533_v38 = vld [vmem:[%s2391_s3 + $0x220] sm:$0xf0]  ;;  %v1064_v43 = vor.u32 %v1477_v33, %v1063_v32  ;;  %v1071_v32 = vld [vmem:[%s2391_s3 + $0x50] sm:$0xf] }
  0x93   :  { %v1288_v44 = vor.u32 %v1533_v38, %v1287_v37  ;;  %v1478_v33 = vld [vmem:[%s2391_s3 + $0x68] sm:$0xf0] }
  0x94   :  { %v1072_v37 = vor.u32 %v1478_v33, %v1071_v32 }
  0x95   :  { %880 = vmatpush.bf16.msra.mxu0 %v1204_v45  ;;  %893 = vmatpush.bf16.msra.mxu1 %v1428_v46  ;;  %v1035_v45 = vld [vmem:[%s2391_s3 + $0x10] sm:$0xf]  ;;  %v1470_v46 = vld [vmem:[%s2391_s3 + $0x28] sm:$0xf0] }
  0x96   :  { %906 = vmatpush.bf16.msra.mxu2 %v1208_v49  ;;  %919 = vmatpush.bf16.msra.mxu3 %v1432_v50  ;;  %v1292_v49 = vor.u32 %v1530_v41, %v1289_v42  ;;  %v1526_v50 = vld [vmem:[%s2391_s3 + $0x1e8] sm:$0xf0]  ;;  %v1036_v59 = vor.u32 %v1470_v46, %v1035_v45  ;;  %v1267_v41 = vld [vmem:[%s2391_s3 + $0x1d8] sm:$0xf]  ;;  %v1527_v42 = vld [vmem:[%s2391_s3 + $0x1f0] sm:$0xf0] }
  0x97   :  { %v1260_v60 = vor.u32 %v1526_v50, %v1259_v47  ;;  %v2376_v45 = vld [vmem:[%s2392_s4] sm:$0x7f] }
  0x98   :  { %v185_v46 = vperm.slane %v2376_v45, 0  ;;  %v190_v32 = vperm.slane %v2376_v45, 5 }
  0x99   :  { %881 = vmatpush.bf16.msra.mxu0 %v1176_v57  ;;  %894 = vmatpush.bf16.msra.mxu1 %v1400_v58  ;;  %v1463_v57 = vld [vmem:[%s2391_s3 + $0x360] sm:$0xf]  ;;  %v1576_v58 = vld [vmem:[%s2391_s3 + $0x378] sm:$0xf0] }
  0x9a   :  { %907 = vmatpush.bf16.msra.mxu2 %v1180_v61  ;;  %920 = vmatpush.bf16.msra.mxu3 %v1404_v62  ;;  %v1040_v61 = vor.u32 %v1467_v51, %v1037_v52  ;;  %v1264_v62 = vor.u32 %v1523_v53, %v1261_v54  ;;  %v1464_v0 = vor.u32 %v1576_v58, %v1463_v57  ;;  %v186_v51 = vperm.slane %v2376_v45, 1 }
  0x9d   :  { %882 = vmatpush.bf16.msra.mxu0 %v1148_v5  ;;  %895 = vmatpush.bf16.msra.mxu1 %v1372_v6  ;;  %v1212_v5 = vor.u32 %v1513_v2, %v1211_v1  ;;  %v1436_v6 = vor.u32 %v1569_v4, %v1435_v3 }
  0x9e   :  { %908 = vmatpush.bf16.msra.mxu2 %v1152_v9  ;;  %921 = vmatpush.bf16.msra.mxu3 %v1376_v10  ;;  %v1407_v9 = vld [vmem:[%s2391_s3 + $0x2f0] sm:$0xf]  ;;  %v1562_v10 = vld [vmem:[%s2391_s3 + $0x308] sm:$0xf0] }
  0x9f   :  { %835 = vmatmul.bf16.vlgmr.msrb.gmra.mxu0 %v2091_v31  ;;  %861 = vmatmul.bf16.vlgmr.msrb.gmra.mxu2 %v2091_v31  ;;  %v1408_v12 = vor.u32 %v1562_v10, %v1407_v9 }
  0xa0   :  { %848 = vmatmul.bf16.vlgmr.msrb.gmra.mxu1 %v2099_v36  ;;  %874 = vmatmul.bf16.vlgmr.msrb.gmra.mxu3 %v2099_v36 }
  0xa1   :  { %883 = vmatpush.bf16.msra.mxu0 %v1120_v17  ;;  %896 = vmatpush.bf16.msra.mxu1 %v1344_v18  ;;  %v1156_v17 = vor.u32 %v1499_v14, %v1155_v13  ;;  %v1380_v18 = vor.u32 %v1555_v16, %v1379_v15 }
  0xa2   :  { %909 = vmatpush.bf16.msra.mxu2 %v1124_v21  ;;  %922 = vmatpush.bf16.msra.mxu3 %v1348_v22  ;;  %v1351_v21 = vld [vmem:[%s2391_s3 + $0x280] sm:$0xf]  ;;  %v1548_v22 = vld [vmem:[%s2391_s3 + $0x298] sm:$0xf0] }
  0xa3   :  { %v1352_v24 = vor.u32 %v1548_v22, %v1351_v21  ;;  %v189_v21 = vperm.slane %v2376_v45, 4 }
  0xa5   :  { %884 = vmatpush.bf16.msra.mxu0 %v1092_v29  ;;  %897 = vmatpush.bf16.msra.mxu1 %v1316_v30  ;;  %v1100_v29 = vor.u32 %v1485_v26, %v1099_v25  ;;  %v1324_v30 = vor.u32 %v1541_v28, %v1323_v27 }
  0xa6   :  { %910 = vmatpush.bf16.msra.mxu2 %v1096_v34  ;;  %923 = vmatpush.bf16.msra.mxu3 %v1320_v35  ;;  %v1295_v34 = vld [vmem:[%s2391_s3 + $0x210] sm:$0xf]  ;;  %v1534_v35 = vld [vmem:[%s2391_s3 + $0x228] sm:$0xf0]  ;;  %s1643_s3 = smov [#allocation2]  }
  0xa7   :  { %v1296_v38 = vor.u32 %v1534_v35, %v1295_v34  ;;  %s1006_s4 = sshll.u32 %s1643_s3, 4  ;;  %s1007_s4 = int_to_ptr.vmem [resolvable:$true] %s1006_s4 }
  0xa9   :  { %885 = vmatpush.bf16.msra.mxu0 %v1064_v43  ;;  %898 = vmatpush.bf16.msra.mxu1 %v1288_v44  ;;  %v1044_v43 = vor.u32 %v1471_v40, %v1043_v39  ;;  %v1268_v44 = vor.u32 %v1527_v42, %v1267_v41 }
  0xaa   :  { %911 = vmatpush.bf16.msra.mxu2 %v1068_v48  ;;  %924 = vmatpush.bf16.msra.mxu3 %v1292_v49 }
  0xad   :  { %886 = vmatpush.bf16.msra.mxu0 %v1036_v59  ;;  %899 = vmatpush.bf16.msra.mxu1 %v1260_v60  ;;  %v187_v60 = vperm.slane %v2376_v45, 2 }
  0xae   :  { %912 = vmatpush.bf16.msra.mxu2 %v1040_v61  ;;  %925 = vmatpush.bf16.msra.mxu3 %v1264_v62 }
  0xb0   :  { %887 = vmatmul.bf16.vlgmr.msra.gmra.mxu0 %v2091_v31  ;;  %900 = vmatmul.bf16.vlgmr.msra.gmra.mxu1 %v2099_v36 }
  0xb1   :  { %931 = vmatpush.bf16.msrb.mxu0 %v1240_v63  ;;  %944 = vmatpush.bf16.msrb.mxu1 %v1464_v0 }
  0xb2   :  { %913 = vmatmul.bf16.vlgmr.msra.gmra.mxu2 %v2091_v31  ;;  %926 = vmatmul.bf16.vlgmr.msra.gmra.mxu3 %v2099_v36 }
  0xb5   :  { %932 = vmatpush.bf16.msrb.mxu0 %v1212_v5  ;;  %945 = vmatpush.bf16.msrb.mxu1 %v1436_v6  ;;  %v188_v5 = vperm.slane %v2376_v45, 3 }
  0xb9   :  { %933 = vmatpush.bf16.msrb.mxu0 %v1184_v11  ;;  %946 = vmatpush.bf16.msrb.mxu1 %v1408_v12 }
  0xbd   :  { %934 = vmatpush.bf16.msrb.mxu0 %v1156_v17  ;;  %947 = vmatpush.bf16.msrb.mxu1 %v1380_v18 }
  0xc1   :  { %935 = vmatpush.bf16.msrb.mxu0 %v1128_v23  ;;  %948 = vmatpush.bf16.msrb.mxu1 %v1352_v24 }
  0xc5   :  { %936 = vmatpush.bf16.msrb.mxu0 %v1100_v29  ;;  %949 = vmatpush.bf16.msrb.mxu1 %v1324_v30 }
  0xc9   :  { %937 = vmatpush.bf16.msrb.mxu0 %v1072_v37  ;;  %950 = vmatpush.bf16.msrb.mxu1 %v1296_v38 }
  0xcd   :  { %938 = vmatpush.bf16.msrb.mxu0 %v1044_v43  ;;  %951 = vmatpush.bf16.msrb.mxu1 %v1268_v44 }
  0xd0   :  { %939 = vmatmul.bf16.vlgmr.msrb.gmra.mxu0 %v2091_v31  ;;  %952 = vmatmul.bf16.vlgmr.msrb.gmra.mxu1 %v2099_v36 }
 0x10c   :  { %v784_v47 = vpop.f32.mrf.mxu0 }
 0x10d   :  { %v785_v48 = vadd.f32 %v784_v47, %v185_v46  ;;  %v797_v49 = vpop.f32.mrf.mxu1 }
 0x10f   :  { %v798_v50 = vadd.f32 %v797_v49, %v785_v48 }
 0x111   :  { %v957_v52 = vsub.f32 0.0, %v798_v50 }
 0x112   :  { %v810_v53 = vpop.f32.mrf.mxu2 }
 0x113   :  { %v964_v54 = vmul.f32 1.442695, %v957_v52  ;;  %v811_v55 = vadd.f32 %v810_v53, %v186_v51  ;;  %v823_v31 = vpop.f32.mrf.mxu3 }
 0x114   :  { %v786_v56 = vpop.f32.mrf.mxu0 }
 0x115   :  { %v824_v36 = vadd.f32 %v823_v31, %v811_v55  ;;  %v799_v57 = vpop.f32.mrf.mxu1  ;;  %1588 = vpow2.f32 %v964_v54  ;;  %v191_v55 = vperm.slane %v2376_v45, 6 }
 0x117   :  { %v958_v58 = vsub.f32 0.0, %v824_v36 }
 0x119   :  { %v966_v59 = vmul.f32 1.442695, %v958_v58 }
 0x11a   :  { %v812_v61 = vpop.f32.mrf.mxu2 }
 0x11b   :  { %1590 = vpow2.f32 %v966_v59  ;;  %v825_v62 = vpop.f32.mrf.mxu3  ;;  %v1589_v63 = vpop.eup %1588 }
 0x11c   :  { %v836_v0 = vpop.f32.mrf.mxu0  ;;  %v978_v3 = vadd.f32 1.0, %v1589_v63 }
 0x11d   :  { %v837_v1 = vadd.f32 %v836_v0, %v187_v60  ;;  %v849_v2 = vpop.f32.mrf.mxu1 }
 0x11e   :  { %1592 = vrcp.f32 %v978_v3 }
 0x11f   :  { %v850_v4 = vadd.f32 %v849_v2, %v837_v1 }
 0x121   :  { %v1591_v6 = vpop.eup %1590  ;;  %v959_v7 = vsub.f32 0.0, %v850_v4 }
 0x122   :  { %v979_v8 = vadd.f32 1.0, %v1591_v6  ;;  %v862_v9 = vpop.f32.mrf.mxu2 }
 0x123   :  { %v968_v10 = vmul.f32 1.442695, %v959_v7  ;;  %v863_v11 = vadd.f32 %v862_v9, %v188_v5  ;;  %v875_v12 = vpop.f32.mrf.mxu3 }
 0x124   :  { %1594 = vrcp.f32 %v979_v8  ;;  %v838_v13 = vpop.f32.mrf.mxu0  ;;  %v1593_v17 = vpop.eup %1592 }
 0x125   :  { %v876_v14 = vadd.f32 %v875_v12, %v863_v11  ;;  %v851_v15 = vpop.f32.mrf.mxu1  ;;  %1596 = vpow2.f32 %v968_v10 }
 0x127   :  { %v960_v16 = vsub.f32 0.0, %v876_v14 }
 0x129   :  { %v970_v18 = vmul.f32 1.442695, %v960_v16 }
 0x12a   :  { %v1595_v19 = vpop.eup %1594  ;;  %v864_v20 = vpop.f32.mrf.mxu2 }
 0x12b   :  { %v992_v22 = vpack.c.bf16 %v1595_v19, %v1593_v17  ;;  %1598 = vpow2.f32 %v970_v18  ;;  %v877_v23 = vpop.f32.mrf.mxu3  ;;  %v1597_v24 = vpop.eup %1596 }
 0x12c   :  { %v980_v28 = vadd.f32 1.0, %v1597_v24 }
 0x12d   :  { %996 = vst [vmem:[#allocation2] sm:$0xff] %v992_v22  ;;  %v888_v25 = vpop.f32.mrf.mxu0  ;;  %v901_v26 = vpop.f32.mrf.mxu1 }
 0x12e   :  { %v889_v27 = vadd.f32 %v888_v25, %v189_v21  ;;  %1600 = vrcp.f32 %v980_v28 }
 0x130   :  { %v902_v29 = vadd.f32 %v901_v26, %v889_v27 }
 0x131   :  { %v1599_v30 = vpop.eup %1598 }
 0x132   :  { %v981_v33 = vadd.f32 1.0, %v1599_v30  ;;  %v961_v34 = vsub.f32 0.0, %v902_v29 }
 0x134   :  { %1602 = vrcp.f32 %v981_v33  ;;  %v972_v35 = vmul.f32 1.442695, %v961_v34  ;;  %v1601_v43 = vpop.eup %1600 }
 0x135   :  { %v914_v37 = vpop.f32.mrf.mxu2  ;;  %v927_v38 = vpop.f32.mrf.mxu3 }
 0x136   :  { %v915_v39 = vadd.f32 %v914_v37, %v190_v32  ;;  %v890_v40 = vpop.f32.mrf.mxu0  ;;  %v903_v41 = vpop.f32.mrf.mxu1  ;;  %1604 = vpow2.f32 %v972_v35 }
 0x138   :  { %v928_v42 = vadd.f32 %v927_v38, %v915_v39 }
 0x13a   :  { %v962_v44 = vsub.f32 0.0, %v928_v42  ;;  %v1603_v46 = vpop.eup %1602 }
 0x13b   :  { %v993_v47 = vpack.c.bf16 %v1603_v46, %v1601_v43 }
 0x13c   :  { %v974_v48 = vmul.f32 1.442695, %v962_v44  ;;  %v1605_v51 = vpop.eup %1604 }
 0x13d   :  { %v916_v49 = vpop.f32.mrf.mxu2  ;;  %v929_v50 = vpop.f32.mrf.mxu3  ;;  %997 = vst [vmem:[#allocation2 + $0x8] sm:$0xff] %v993_v47  ;;  %v982_v52 = vadd.f32 1.0, %v1605_v51 }
 0x13e   :  { %1606 = vpow2.f32 %v974_v48 }
 0x13f   :  { %1608 = vrcp.f32 %v982_v52 }
 0x144   :  { %v1607_v53 = vpop.eup %1606 }
 0x145   :  { %v983_v54 = vadd.f32 1.0, %v1607_v53  ;;  %v1609_v31 = vpop.eup %1608 }
 0x147   :  { %1610 = vrcp.f32 %v983_v54 }
 0x14d   :  { %v940_v56 = vpop.f32.mrf.mxu0  ;;  %v953_v36 = vpop.f32.mrf.mxu1 }
 0x14e   :  { %v1611_v57 = vpop.eup %1610  ;;  %v941_v58 = vadd.f32 %v940_v56, %v191_v55 }
 0x14f   :  { %v994_v59 = vpack.c.bf16 %v1611_v57, %v1609_v31 }
 0x150   :  { %v954_v60 = vadd.f32 %v953_v36, %v941_v58 }
 0x151   :  { %998 = vst [vmem:[#allocation2 + $0x10] sm:$0xff] %v994_v59 }
 0x152   :  { %v963_v61 = vsub.f32 0.0, %v954_v60 }
 0x154   :  { %v976_v62 = vmul.f32 1.442695, %v963_v61 }
 0x155   :  { %v942_v63 = vpop.f32.mrf.mxu0  ;;  %v955_v0 = vpop.f32.mrf.mxu1 }
 0x156   :  { %1612 = vpow2.f32 %v976_v62 }
 0x15c   :  { %v1613_v1 = vpop.eup %1612 }
 0x15d   :  { %v984_v2 = vadd.f32 1.0, %v1613_v1 }
 0x15f   :  { %1614 = vrcp.f32 %v984_v2 }
 0x165   :  { %v1615_v45 = vpop.eup %1614 }
 0x166   :  { %v995_v3 = vpack.c.bf16 %v1615_v45, %v1615_v45 }
 0x168   :  { %1000 = vst.msk [vmem:[#allocation2 + $0x18] sm:$0xf] %vm999_vm0, %v995_v3 }
 0x169   :  { %1011 = dma.vmem_to_hbm [thread:$0]  %s1007_s4, 448, %s1009_s1, [#allocation3]  }
 0x16a   :  { %1640 = dma.done.wait [#allocation3], 448  }
 0x16b   :  { %1641 = vsyncadd [#allocation3], 4294966848 }
 0x16c   :  { %1016 = vsyncpa [#allocation3], 1 }

</bundles_post_ra>
